<compile_context>
chip_gen: v5e
topology: v5e:2x2
jax: 0.10.0
libtpu: 0.0.40
codegen_flags: <defaults>
</compile_context>

<pallas_src>
import functools

import jax
import jax.numpy as jnp
from jax import lax
from jax.experimental import pallas as pl
from jax.experimental.pallas import tpu as pltpu


def _recon_kernel(n_dim, flatten_out, y_ref, first_ref, cls_ref, w_ref, b_ref,
                  out_ref):
    labels = y_ref[...]                                    # (Bt, 1) int32
    cls = cls_ref[...]                                     # (Bt, C*D)

    # One-hot mask over the class-major flattened capsule; divide-free range
    # test: element j belongs to the selected class iff y*D <= j < (y+1)*D.
    col = lax.broadcasted_iota(jnp.int32, cls.shape, 1)    # (Bt, C*D)
    lo = labels * n_dim                                    # (Bt, 1)
    keep = (col >= lo) & (col < lo + n_dim)
    masked = jnp.where(keep, cls, jnp.zeros_like(cls))     # (Bt, C*D)

    # fc1: (Bt, C*D) @ (C*D, H) + bias, ReLU.  Weight/bias are resident in
    # VMEM (constant index map) and arrive pre-cast from the wrapper, so there
    # is no per-step convert of the resident block.  f32 MXU accumulation.
    h = jnp.dot(masked, w_ref[...], preferred_element_type=jnp.float32)
    h = jnp.maximum(h + b_ref[...].astype(jnp.float32), 0.0)   # (Bt, H) f32

    # Broadcast-add over the N first capsules; stays in the streaming dtype
    # (bf16 when use_bf16 on v6e/v7x), only the small (Bt, H) h is converted.
    first = first_ref[...]                                 # (Bt, N, H)
    x = first + jnp.expand_dims(h.astype(first.dtype), 1)  # (Bt, N, H)

    # Batched Gram matrix: contract the last (lane) dim of both operands on
    # the MXU — no transposed copy of x.
    # NOTE: with very small N the per-batch NxH @ HxN matmuls underfill the
    # MXU; only reformulate (VPU outer-product / batch-into-M) if a bundle
    # dump shows the MXU push slot saturating — at typical capsule-head shapes
    # this kernel is HBM-bound, not MXU-bound.
    gram = lax.dot_general(
        x, x,
        dimension_numbers=(((2,), (2,)), ((0,), (0,))),
        preferred_element_type=jnp.float32)                # (Bt, N, N)
    gram = gram.astype(out_ref.dtype)

    if flatten_out:
        # Lane-dense writeback: build the (Bt, N*N) row-major flat Gram with a
        # minor-dim concatenate (well-supported lane shifts; avoids an
        # in-register reshape of the tiled last-two dims).
        n = gram.shape[1]
        flat = jnp.concatenate([gram[:, i, :] for i in range(n)], axis=1)
        out_ref[...] = flat                                # (Bt, N*N)
    else:
        out_ref[...] = gram                                # (Bt, N, N)


def _vmem_capacity_bytes():
    """Physical per-core VMEM; conservative v7x default if the query fails."""
    try:
        cap = int(pltpu.get_tpu_info().vmem_capacity_bytes)
        if cap > 0:
            return cap
    except Exception:
        pass
    return 64 * 2**20


def _pick_batch_tile(B, per_step_bytes, budget):
    """Largest batch tile that (a) divides B, (b) is sublane-aligned (multiple
    of 8, or the full B), (c) fits the double-buffered VMEM budget; preferring
    even grid-step counts (v7x 2-TC balance) and >=4 steps over a 1-2 step
    grid (pipeline overlap), then the largest tile (MXU M / DMA width)."""
    if B <= 8:
        return B
    cands = [bt for bt in range(8, min(B, 256) + 1, 8) if B % bt == 0]
    if not cands:
        return B                      # no aligned divisor: one full-extent block
    fitting = [bt for bt in cands if per_step_bytes(bt) <= budget]
    pool = fitting if fitting else [min(cands)]

    def pref(bt):
        steps = B // bt
        return (steps % 2 == 0, steps >= 2, steps >= 4, bt)

    return max(pool, key=pref)


def reconstruction_net(first_capsule, class_capsule, y, w_fc1, b_fc1,
                       *, n_dim, n_classes, use_bf16=False, batch_tile=None):
    """first_capsule: (B, N, H); class_capsule: (B, C, D); y: (B,) int.
    w_fc1: (H, C*D) (torch nn.Linear layout); b_fc1: (H,). Returns (B, N, N)."""
    B, N, H = first_capsule.shape
    CD = n_dim * n_classes
    stream_dtype = jnp.bfloat16 if use_bf16 else jnp.float32
    sb = jnp.dtype(stream_dtype).itemsize

    # Glue (fuses with the caller under jit).  For production, store fc1's
    # weight pre-transposed as (C*D, H) so no per-call XLA transpose runs.
    first_in = first_capsule.astype(stream_dtype)
    cls_flat = class_capsule.reshape(B, CD).astype(stream_dtype)
    w_t = jnp.asarray(w_fc1, jnp.float32).T.astype(stream_dtype)   # (C*D, H)
    b_row = jnp.asarray(b_fc1, jnp.float32).reshape(1, H).astype(stream_dtype)
    y_col = y.astype(jnp.int32).reshape(B, 1)

    flatten_out = N < 128             # lane-dense output when last dim is narrow

    def per_step_bytes(bt):
        # Every operand block is double-buffered by the BlockSpec pipeline
        # (the constant-index weight/bias blocks included — pl.Buffered(1)
        # would shave their second buffer, but we budget for the default).
        stream = bt * (N * H + CD + N * N) * sb + bt * 4   # + int32 labels
        resident = (CD * H + H) * sb
        return 2 * (stream + resident)

    cap = _vmem_capacity_bytes()
    budget = (2 * cap) // 5           # ~40%: ≈26 MiB (v7x) / ≈51 MiB (v5e,v6e)
    Bt = batch_tile if batch_tile is not None else _pick_batch_tile(
        B, per_step_bytes, budget)
    assert B % Bt == 0, "batch tile must divide B"
    assert Bt == B or Bt % 8 == 0, "partial batch tiles must be sublane-aligned"
    grid = (B // Bt,)

    footprint = per_step_bytes(Bt)
    vmem_limit = max(footprint + footprint // 4 + (4 << 20), 16 << 20)
    vmem_limit = int(min(vmem_limit, (3 * cap) // 4))      # up to ~96 MiB on v5e/v6e
    vmem_limit = int(max(vmem_limit, footprint + (2 << 20)))

    kernel = functools.partial(_recon_kernel, n_dim, flatten_out)

    cost = pl.CostEstimate(
        flops=2 * B * (CD * H + N * N * H),
        transcendentals=0,
        bytes_accessed=sb * (B * N * H + B * CD + CD * H + H + B * N * N) + 4 * B)

    if flatten_out:
        out_struct = jax.ShapeDtypeStruct((B, N * N), stream_dtype)
        out_spec = pl.BlockSpec((Bt, N * N), lambda i: (i, 0))
    else:
        out_struct = jax.ShapeDtypeStruct((B, N, N), stream_dtype)
        out_spec = pl.BlockSpec((Bt, N, N), lambda i: (i, 0, 0))

    grid_spec = pltpu.PrefetchScalarGridSpec(
        num_scalar_prefetch=0,
        grid=grid,
        in_specs=[
            pl.BlockSpec((Bt, 1), lambda i: (i, 0)),        # labels (int32)
            # first_capsule kept 3-D: its trailing dims are full-extent, so the
            # block is legal for any N/H; flattening to (B, N*H) is a further
            # input-DMA-density option when H < 128.
            pl.BlockSpec((Bt, N, H), lambda i: (i, 0, 0)),  # first_capsule
            pl.BlockSpec((Bt, CD), lambda i: (i, 0)),       # flattened class cap
            # fc1 weight^T / bias: constant index maps keep them resident in
            # VMEM across grid steps (already pre-cast in the wrapper).
            pl.BlockSpec((CD, H), lambda i: (0, 0)),        # fc1 weight^T
            pl.BlockSpec((1, H), lambda i: (0, 0)),         # fc1 bias
        ],
        out_specs=out_spec,
    )

    out = pl.pallas_call(
        kernel,
        out_shape=out_struct,
        grid_spec=grid_spec,
        compiler_params=pltpu.CompilerParams(
            dimension_semantics=("parallel",),
            vmem_limit_bytes=vmem_limit),
        cost_estimate=cost,
    )(y_col, first_in, cls_flat, w_t, b_row)

    return out.reshape(B, N, N) if flatten_out else out


def reconstruction_net_ref(first_capsule, class_capsule, y, w_fc1, b_fc1,
                           *, n_dim, n_classes):
    """Pure-JAX reference for correctness checking."""
    B = class_capsule.shape[0]
    mask = jax.nn.one_hot(y, n_classes, dtype=jnp.float32)[:, :, None]
    cc = (class_capsule * mask).reshape(B, 1, n_dim * n_classes)
    h = jax.nn.relu(jnp.einsum("bik,hk->bih", cc, w_fc1,
                               precision=lax.Precision.HIGHEST) + b_fc1)
    x = first_capsule + h
    return jnp.einsum("bnh,bmh->bnm", x, x, precision=lax.Precision.HIGHEST)


if __name__ == "__main__":
    # Small, forward-consistent shapes; B=16 exercises batch tiling with two
    # grid steps (Bt=8) and N=8 exercises the lane-dense flattened output.
    B, N, H = 16, 8, 32         # batch, first-capsule count, hidden
    n_classes, n_dim = 4, 4     # class capsules and their dimension

    key = jax.random.PRNGKey(0)
    k1, k2, k3, k4, k5 = jax.random.split(key, 5)

    first_capsule = jax.random.normal(k1, (B, N, H), jnp.float32)
    class_capsule = jax.random.normal(k2, (B, n_classes, n_dim), jnp.float32)
    y = jax.random.randint(k3, (B,), 0, n_classes, jnp.int32)

    # Deterministic fc1 params (torch nn.Linear layout: (out, in) + (out,)).
    fan_in = n_dim * n_classes
    bound = 1.0 / (fan_in ** 0.5)
    w_fc1 = jax.random.uniform(k4, (H, fan_in), jnp.float32, -bound, bound)
    b_fc1 = jax.random.uniform(k5, (H,), jnp.float32, -bound, bound)

    ref = reconstruction_net_ref(first_capsule, class_capsule, y, w_fc1, b_fc1,
                                 n_dim=n_dim, n_classes=n_classes)

    # Default exact-f32 streaming path.
    out = reconstruction_net(first_capsule, class_capsule, y, w_fc1, b_fc1,
                             n_dim=n_dim, n_classes=n_classes)
    out = jax.block_until_ready(out)
    assert out.shape == (B, N, N)
    # Tolerance covers MXU multi-pass f32 vs XLA matmul precision differences.
    assert jnp.allclose(out, ref, rtol=1e-2, atol=1e-2), "f32 mismatch vs reference"

    # Opt-in bf16 streaming path (halves HBM traffic); looser tolerance since
    # inputs/outputs are rounded to bf16.
    out_bf16 = reconstruction_net(first_capsule, class_capsule, y, w_fc1, b_fc1,
                                  n_dim=n_dim, n_classes=n_classes,
                                  use_bf16=True)
    out_bf16 = jax.block_until_ready(out_bf16)
    assert out_bf16.shape == (B, N, N)
    assert jnp.allclose(out_bf16.astype(jnp.float32), ref,
                        rtol=5e-2, atol=1e-1), "bf16 mismatch vs reference"

    print("KERNEL_OK")
</pallas_src>

<mosaic_0001>
module attributes {stable_mosaic.version = 11 : i64} {
  func.func @_recon_kernel(%arg0: i32, %arg1: memref<8x1xi32, #tpu.memory_space<vmem>>, %arg2: memref<8x8x32xf32, #tpu.memory_space<vmem>>, %arg3: memref<8x16xf32, #tpu.memory_space<vmem>>, %arg4: memref<16x32xf32, #tpu.memory_space<vmem>>, %arg5: memref<1x32xf32, #tpu.memory_space<vmem>>, %arg6: memref<8x64xf32, #tpu.memory_space<vmem>>) attributes {dimension_semantics = [#tpu.dimension_semantics<parallel>], iteration_bounds = array<i64: 2>, scalar_prefetch = 0 : i64, scratch_operands = 0 : i64, tpu.core_type = #tpu.core_type<tc>, window_params = [{transform_indices = @transform_0, window_bounds = array<i64: 8, 1>}, {transform_indices = @transform_1, window_bounds = array<i64: 8, 8, 32>}, {transform_indices = @transform_2, window_bounds = array<i64: 8, 16>}, {pipeline_mode = #tpu.pipeline_mode<synchronous>, transform_indices = @transform_3, window_bounds = array<i64: 16, 32>}, {pipeline_mode = #tpu.pipeline_mode<synchronous>, transform_indices = @transform_4, window_bounds = array<i64: 1, 32>}, {transform_indices = @transform_5, window_bounds = array<i64: 8, 64>}]} {
    %c0 = arith.constant 0 : index
    %c0_0 = arith.constant 0 : index
    %0 = vector.load %arg1[%c0, %c0_0] : memref<8x1xi32, #tpu.memory_space<vmem>>, vector<8x1xi32>
    %c0_1 = arith.constant 0 : index
    %c0_2 = arith.constant 0 : index
    %1 = vector.load %arg3[%c0_1, %c0_2] : memref<8x16xf32, #tpu.memory_space<vmem>>, vector<8x16xf32>
    %2 = tpu.iota {dimensions = array<i32: 1>} : vector<8x16xi32>
    %c4_i32 = arith.constant 4 : i32
    %3 = vector.broadcast %c4_i32 : i32 to vector<8x1xi32>
    %4 = arith.muli %0, %3 : vector<8x1xi32>
    %5 = vector.broadcast %4 : vector<8x1xi32> to vector<8x16xi32>
    %6 = arith.cmpi sge, %2, %5 : vector<8x16xi32>
    %c4_i32_3 = arith.constant 4 : i32
    %7 = vector.broadcast %c4_i32_3 : i32 to vector<8x1xi32>
    %8 = arith.addi %4, %7 : vector<8x1xi32>
    %9 = vector.broadcast %8 : vector<8x1xi32> to vector<8x16xi32>
    %10 = arith.cmpi slt, %2, %9 : vector<8x16xi32>
    %11 = arith.andi %6, %10 : vector<8x16xi1>
    %cst = arith.constant 0.000000e+00 : f32
    %12 = vector.broadcast %cst : f32 to vector<8x16xf32>
    %13 = arith.select %11, %1, %12 : vector<8x16xi1>, vector<8x16xf32>
    %c0_4 = arith.constant 0 : index
    %c0_5 = arith.constant 0 : index
    %14 = vector.load %arg4[%c0_4, %c0_5] : memref<16x32xf32, #tpu.memory_space<vmem>>, vector<16x32xf32>
    %cst_6 = arith.constant dense<0.000000e+00> : vector<8x32xf32>
    %15 = tpu.matmul %13, %14, %cst_6 {dimension_numbers = #tpu.dot_dimension_numbers<[1], [0], [0], [1], [0, 0, 1, 1], [], []>} : vector<8x16xf32>, vector<16x32xf32>, vector<8x32xf32> -> vector<8x32xf32>
    %c0_7 = arith.constant 0 : index
    %c0_8 = arith.constant 0 : index
    %16 = vector.load %arg5[%c0_7, %c0_8] : memref<1x32xf32, #tpu.memory_space<vmem>>, vector<1x32xf32>
    %17 = vector.broadcast %16 : vector<1x32xf32> to vector<8x32xf32>
    %18 = arith.addf %15, %17 : vector<8x32xf32>
    %cst_9 = arith.constant 0.000000e+00 : f32
    %19 = vector.broadcast %cst_9 : f32 to vector<8x32xf32>
    %20 = arith.maximumf %18, %19 : vector<8x32xf32>
    %c0_10 = arith.constant 0 : index
    %c0_11 = arith.constant 0 : index
    %c0_12 = arith.constant 0 : index
    %21 = vector.load %arg2[%c0_10, %c0_11, %c0_12] : memref<8x8x32xf32, #tpu.memory_space<vmem>>, vector<8x8x32xf32>
    %22 = vector.shape_cast %20 : vector<8x32xf32> to vector<8x1x32xf32>
    %23 = vector.broadcast %22 : vector<8x1x32xf32> to vector<8x8x32xf32>
    %24 = arith.addf %21, %23 : vector<8x8x32xf32>
    %cst_13 = arith.constant dense<0.000000e+00> : vector<8x8x8xf32>
    %25 = tpu.matmul %24, %24, %cst_13 {dimension_numbers = #tpu.dot_dimension_numbers<[2], [2], [1], [1], [0, 0, 0, 1, 1, 1], [0], [0]>} : vector<8x8x32xf32>, vector<8x8x32xf32>, vector<8x8x8xf32> -> vector<8x8x8xf32>
    %26 = vector.extract_strided_slice %25 {offsets = [0, 0, 0], sizes = [8, 1, 8], strides = [1, 1, 1]} : vector<8x8x8xf32> to vector<8x1x8xf32>
    %27 = vector.shape_cast %26 : vector<8x1x8xf32> to vector<8x8xf32>
    %28 = vector.extract_strided_slice %25 {offsets = [0, 1, 0], sizes = [8, 1, 8], strides = [1, 1, 1]} : vector<8x8x8xf32> to vector<8x1x8xf32>
    %29 = vector.shape_cast %28 : vector<8x1x8xf32> to vector<8x8xf32>
    %30 = vector.extract_strided_slice %25 {offsets = [0, 2, 0], sizes = [8, 1, 8], strides = [1, 1, 1]} : vector<8x8x8xf32> to vector<8x1x8xf32>
    %31 = vector.shape_cast %30 : vector<8x1x8xf32> to vector<8x8xf32>
    %32 = vector.extract_strided_slice %25 {offsets = [0, 3, 0], sizes = [8, 1, 8], strides = [1, 1, 1]} : vector<8x8x8xf32> to vector<8x1x8xf32>
    %33 = vector.shape_cast %32 : vector<8x1x8xf32> to vector<8x8xf32>
    %34 = vector.extract_strided_slice %25 {offsets = [0, 4, 0], sizes = [8, 1, 8], strides = [1, 1, 1]} : vector<8x8x8xf32> to vector<8x1x8xf32>
    %35 = vector.shape_cast %34 : vector<8x1x8xf32> to vector<8x8xf32>
    %36 = vector.extract_strided_slice %25 {offsets = [0, 5, 0], sizes = [8, 1, 8], strides = [1, 1, 1]} : vector<8x8x8xf32> to vector<8x1x8xf32>
    %37 = vector.shape_cast %36 : vector<8x1x8xf32> to vector<8x8xf32>
    %38 = vector.extract_strided_slice %25 {offsets = [0, 6, 0], sizes = [8, 1, 8], strides = [1, 1, 1]} : vector<8x8x8xf32> to vector<8x1x8xf32>
    %39 = vector.shape_cast %38 : vector<8x1x8xf32> to vector<8x8xf32>
    %40 = vector.extract_strided_slice %25 {offsets = [0, 7, 0], sizes = [8, 1, 8], strides = [1, 1, 1]} : vector<8x8x8xf32> to vector<8x1x8xf32>
    %41 = vector.shape_cast %40 : vector<8x1x8xf32> to vector<8x8xf32>
    %42 = tpu.concatenate %27, %29, %31, %33, %35, %37, %39, %41 in 1 : vector<8x8xf32>, vector<8x8xf32>, vector<8x8xf32>, vector<8x8xf32>, vector<8x8xf32>, vector<8x8xf32>, vector<8x8xf32>, vector<8x8xf32> -> vector<8x64xf32>
    %c0_14 = arith.constant 0 : index
    %c0_15 = arith.constant 0 : index
    %43 = vector.load %arg6[%c0_14, %c0_15] : memref<8x64xf32, #tpu.memory_space<vmem>>, vector<8x64xf32>
    tpu.vector_store %arg6[%c0_14, %c0_15], %42 {strides = array<i32>} : memref<8x64xf32, #tpu.memory_space<vmem>>, vector<8x64xf32>,
    return
  }
  func.func @transform_0(%arg0: i32) -> (i32, i32) {
    %c0_i32 = arith.constant 0 : i32
    %c0_i32_0 = arith.constant 0 : i32
    return %arg0, %c0_i32 : i32, i32
  }
  func.func @transform_1(%arg0: i32) -> (i32, i32, i32) {
    %c0_i32 = arith.constant 0 : i32
    %c0_i32_0 = arith.constant 0 : i32
    %c0_i32_1 = arith.constant 0 : i32
    return %arg0, %c0_i32, %c0_i32_0 : i32, i32, i32
  }
  func.func @transform_2(%arg0: i32) -> (i32, i32) {
    %c0_i32 = arith.constant 0 : i32
    %c0_i32_0 = arith.constant 0 : i32
    return %arg0, %c0_i32 : i32, i32
  }
  func.func @transform_3(%arg0: i32) -> (i32, i32) {
    %c0_i32 = arith.constant 0 : i32
    %c0_i32_0 = arith.constant 0 : i32
    %c0_i32_1 = arith.constant 0 : i32
    return %c0_i32, %c0_i32_0 : i32, i32
  }
  func.func @transform_4(%arg0: i32) -> (i32, i32) {
    %c0_i32 = arith.constant 0 : i32
    %c0_i32_0 = arith.constant 0 : i32
    %c0_i32_1 = arith.constant 0 : i32
    return %c0_i32, %c0_i32_0 : i32, i32
  }
  func.func @transform_5(%arg0: i32) -> (i32, i32) {
    %c0_i32 = arith.constant 0 : i32
    %c0_i32_0 = arith.constant 0 : i32
    return %arg0, %c0_i32 : i32, i32
  }
}

</mosaic_0001>

<bundles_post_ra>
// kernel: tpu_custom_call.1
= control target key start
LH: loop header
LB: loop body
LE: loop exit
PB: predicated region body
PF: predicated region fallthrough
CT: control target
= control target key end

     0   :  { %10 = vsyncpa [#allocation3], 0  ;;  %s1460_s0 = inlined_call_operand.vmem [shape: s32[16,1], index: 0, kind: input, shape index: {}]   ;;  %s1461_s1 = inlined_call_operand.hbm [shape: f32[16,8,32], index: 1, kind: input, shape index: {}]   ;;  %s1462_s2 = inlined_call_operand.vmem [shape: f32[16,16], index: 2, kind: input, shape index: {}]   ;;  %s1463_s3 = inlined_call_operand.hbm [shape: f32[16,32], index: 3, kind: input, shape index: {}]   ;;  %s1464_s4 = inlined_call_operand.vmem [shape: f32[1,32], index: 4, kind: input, shape index: {}]   ;;  %s1465_s5 = inlined_call_operand.hbm [shape: f32[16,64], index: 5, kind: output, shape index: {}]  }
   0x1   :  { %12 = vsyncpa [#allocation3 + $0x1], 0 }
   0x2   :  { %13 = vsyncpa [#allocation6], 0 }
   0x3   :  { %14 = vsyncpa [#allocation4], 0 }
   0x4   :  { %16 = vsyncpa [#allocation4 + $0x1], 0  ;;  %s1129_s18 = smov 0   ;;  %s1131_s19 = smov 0  }
   0x5   :  { %s1133_s20 = smov 0   ;;  %s1135_s21 = smov 0  }
   0x6 LB: > { %s1150_s22 = sadd.s32 4294967295, %s1086_s21   ;;  %s852_s23 = sadd.s32 4294967294, %s1086_s21   ;;  %s1086_s21 = sphi %s1135_s21, %s1477_s21   ;;  %s1082_s20 = sphi %s1133_s20, %s1476_s20   ;;  %s1078_s19 = sphi %s1131_s19, %s1475_s19   ;;  %s1074_s18 = sphi %s1129_s18, %s1474_s18  }
   0x7   : > { %p68_p0 = scmp.ne.s32.totalorder %s1078_s19, %s1074_s18  ;;  %p69_p1 = scmp.eq.s32.totalorder %s1150_s22, 0 }
   0x8   : > { %p160_p2 = scmp.eq.s32.totalorder %s1150_s22, 1  ;;  %p166_p3 = scmp.eq.s32.totalorder %s852_s23, 1 }
   0x9   : > { %p1159_p4 = por %p69_p1, %p68_p0  ;;  %p853_p5 = scmp.ge.s32.totalorder %s1086_s21, 1 }
   0xa   : > { %p1164_p6 = por %p166_p3, %p68_p0  ;;  %p173_p7 = scmp.lt.s32.totalorder %s1086_s21, 3 }
   0xb   : > { %s184_s28 = sshll.u32 %s1463_s3, 4  ;;  %s1088_s30 = smov [#allocation5]   ;;  %s185_s28 = int_to_ptr.hbm [resolvable:$true] %s184_s28 }
   0xc   : > { %p1172_p8 = pnand %p853_p5, %p173_p7  ;;  %s186_s6 = sshll.u32 %s1088_s30, 4  ;;  %s187_s6 = int_to_ptr.vmem [resolvable:$true] %s186_s6 }
   0xd   : > { %s1182_s7 = sadd.s32 1, %s1086_s21   ;;  %s1466_s8 = smov 128  }
   0xe   : > { %p895_p9 = pneg %p1172_p8  ;;  %s1090_s9 = smov 8  }
   0xf   : > { %s52_s10 = ssub.s32 %s1086_s21, %s1182_s7  ;;  %s55_s11 = sadd.s32 1, %s1082_s20 }
  0x10   : > { %p896_p10 = pnand %p895_p9, %p69_p1  ;;  %p53_p12 = scmp.eq.s32.totalorder %s52_s10, 0 }
  0x11   : > { %p62_p13 = scmp.ne.s32.totalorder %s1082_s20, %s1078_s19  ;;  %p63_p0 = scmp.eq.s32.totalorder %s1086_s21, 0 }
  0x12   : > { %898 = dma.hbm_to_vmem [thread:$0]  (!%p896_p10), %s185_s28, 256, %s187_s6, [#allocation6], %s1466_s8, %s1466_s8, %s1090_s9  }
  0x13   : > { %s1194_s12 = scalar_select %p53_p12, %s1082_s20, %s55_s11  }
  0x14   : > { %p1198_p3 = por %p160_p2, %p62_p13  ;;  %p908_p5 = scmp.lt.s32.totalorder %s1086_s21, 2 }
  0x15   : > { %s210_s14 = sand.u32 1, %s1082_s20   ;;  %s886_s15 = sshll.u32 %s1086_s21, 6 }
  0x16   : > { %p64_p7 = por %p63_p0, %p62_p13  ;;  %s856_s16 = sshll.u32 %s210_s14, 6 }
  0x17   : > { %s219_s26 = scalar_lea.hbm %s1461_s1, %s886_s15  ;;  %s214_s28 = scalar_lea.vmem [#allocation2], %s856_s16 }
  0x18   : > { %s220_s27 = sshll.u32 %s219_s26, 4  ;;  %s222_s30 = sshll.u32 %s214_s28, 4  ;;  %s221_s27 = int_to_ptr.hbm [resolvable:$true] %s220_s27  ;;  %s223_s30 = int_to_ptr.vmem [resolvable:$true] %s222_s30 }
  0x19   : > { %p1208_p9 = pnand %p908_p5, %p64_p7  ;;  %s211_s10 = scalar_lea.sflag [#allocation3], %s210_s14 }
  0x1a   : > { %s986_s11 = sshra.s32 %s221_s27, 4  ;;  %s993_s16 = scalar_lea.hbm %s1461_s1, 128  ;;  %s987_s11 = int_to_ptr.hbm [resolvable:$true] %s986_s11 }
  0x1b   : > { %s988_s8 = scalar_lea.hbm %s987_s11, 64  ;;  %p990_p10 = pneg %p1208_p9 }
  0x1c   : > { %p989_p2 = scmp.ne.s32.totalorder %s987_s11, %s988_s8  ;;  %p994_p0 = scmp.lt.s32.totalorder %s987_s11, %s1461_s1 }
  0x1d   : > { %p995_p5 = scmp.lt.s32.totalorder %s993_s16, %s988_s8 }
  0x1e   : > { %p991_p12 = pnand %p990_p10, %p989_p2 }
  0x1f   : > { %p996_p7 = por %p995_p5, %p994_p0 }
  0x20   : > { %p992_p13 = pneg %p991_p12 }
  0x22   : > { %p997_p11 = pnand %p996_p7, %p992_p13 }
  0x24   : > { %1000 = shalt.err (!%p997_p11)
}
  0x25   : > { %s1472_s14 = smov 128   ;;  %241 = sbr.rel (%p1172_p8) target bundleno = 601 (0x259), region = 40 }
  0x26   : > { %902 = dma.hbm_to_vmem [thread:$0]  (!%p1208_p9), %s221_s27, 1024, %s223_s30, %s211_s10, %s1472_s14, %s1472_s14, %s1090_s9  }
  0x27   : > { %s1228_s28 = sand.u32 (!%p1172_p8), 1, %s1078_s19  }
  0x28   : > { %s860_s11 = sshll.u32 (!%p1172_p8), %s1228_s28, 6  ;;  %s244_s8 = scalar_lea.sflag (!%p1172_p8), [#allocation3], %s1228_s28 }
  0x29   : > { %s1232_s15 = scalar_lea.vmem (!%p1172_p8), [#allocation2], %s860_s11 }
  0x2a   : > { %1061 = dma.done.wait (%p1159_p4), %s244_s8, 1024  }
  0x2b   : > { %1063 = vsyncadd (%p1159_p4), %s244_s8, 4294966272 }
  0x2c   : > { %1065 = dma.done.wait (%p69_p1), [#allocation6], 256  }
  0x2d   : > { %1067 = vsyncadd (%p69_p1), [#allocation6], 4294967040  ;;  %p288_p8 = scmp.lt.s32.totalorder %s1150_s22, 1  ;;  %v1091_v0 = vmov 0   ;;  %v314_v4 = vld [vmem:[#allocation5 + $0x8] sm:$0xff]  ;;  %v313_v5 = vld [vmem:[#allocation5] sm:$0xff]  ;;  %v299_v7 = vlaneseq }
  0x2e   : > { %954 = vset.pattern.permute.xlu0 %v1091_v0  ;;  %337 = vmatpush.msra.mxu0 %v314_v4  ;;  %vm319_vm2 = vcmask 130048   ;;  %v955_v12 = vld [vmem:[%s1464_s4] ss:$0 sm:$0xff]  ;;  %vm384_vm4 = vcmask 261120   ;;  %v345_v18 = vld [vmem:[%s1232_s15 + $0x8] sm:$0xff]  ;;  %v346_v20 = vld [vmem:[%s1232_s15 + $0x10] sm:$0xff] }
  0x2f   : > { %s289_s29 = scalar_select %p288_p8, %s1150_s22, 1  ;;  %v300_v8 = vand.u32 127, %v299_v7  ;;  %v344_v16 = vld [vmem:[%s1232_s15] sm:$0xff]  ;;  %v347_v23 = vld [vmem:[%s1232_s15 + $0x18] sm:$0xff]  ;;  %v349_v33 = vld [vmem:[%s1232_s15 + $0x28] sm:$0xff]  ;;  %vm578_vm5 = vcmask 1041409  }
  0x30   : > { %338 = vmatpush.msra.mxu0 %v313_v5  ;;  %v348_v24 = vld [vmem:[%s1232_s15 + $0x20] sm:$0xff]  ;;  %v350_v34 = vld [vmem:[%s1232_s15 + $0x30] sm:$0xff]  ;;  %v351_v35 = vld [vmem:[%s1232_s15 + $0x38] sm:$0xff]  ;;  %vm581_vm6 = vcmask 1042434   ;;  %vm584_vm7 = vcmask 1043459   ;;  %vm587_vm8 = vcmask 1044484  }
  0x31   : > { %s863_s9 = sshll.u32 %s289_s29, 3  ;;  %vm590_vm9 = vcmask 1045509   ;;  %vm593_vm10 = vcmask 1046534   ;;  %vm596_vm11 = vcmask 1047559   ;;  %s1092_s26 = smov 40   ;;  %vm718_vm12 = vcmask 64512  }
  0x32   : > { %s291_s6 = scalar_lea.vmem %s1460_s0, %s863_s9  ;;  %s296_s17 = scalar_lea.vmem %s1462_s2, %s863_s9  ;;  %vm721_vm13 = vcmask 195584   ;;  %vm724_vm14 = vcmask 326656   ;;  %vm726_vm15 = vcmask 392192  }
  0x33   : > { %v297_v1 = vld [vmem:[%s291_s6] sm:$0xff]  ;;  %s1093_s14 = smov 24   ;;  %s1094_s11 = smov 8  }
  0x34   : > { %v301_v2 = vmul.u32 4, %v297_v1  ;;  %v298_v10 = vld [vmem:[%s296_s17] sm:$0xff]  ;;  %s1095_s8 = smov 32   ;;  %s1096_s15 = smov 16  }
  0x35   : > { %s1097_s29 = smov 56   ;;  %s1098_s9 = smov 48  }
  0x36   : > { %303 = vperm.xlu0 %954, %v301_v2   ;;  %v306_v3 = vadd.s32 4, %v301_v2  ;;  %s862_s27 = sshll.u32 %s1228_s28, 3  ;;  %s883_s30 = sshll.u32 %s1150_s22, 3 }
  0x37   : > { %s743_s10 = scalar_lea.hbm %s1465_s5, %s883_s30  ;;  %s287_s17 = scalar_lea.vmem [#allocation7], %s862_s27 }
  0x38   : > { %s745_s16 = sshll.u32 %s287_s17, 4  ;;  %s747_s23 = sshll.u32 %s743_s10, 4  ;;  %s746_s16 = int_to_ptr.vmem [resolvable:$true] %s745_s16  ;;  %s748_s23 = int_to_ptr.hbm [resolvable:$true] %s747_s23 }
  0x39   : > { %s733_s22 = scalar_lea.sflag [#allocation4], %s1228_s28 }
  0x3e   : > { %308 = vperm.xlu0 %954, %v306_v3  }
  0xa8   : > { %v304_v6 = vpop.permute.xlu0 %303 }
  0xa9   : > { %vm305_vm0 = vcmp.ge.s32.totalorder %v300_v8, %v304_v6 }
  0xb0   : > { %v309_v9 = vpop.permute.xlu0 %308 }
  0xb1   : > { %vm310_vm1 = vcmp.lt.s32.totalorder %v300_v8, %v309_v9 }
  0xb2   : > { %vm311_vm3 = vmand %vm305_vm0, %vm310_vm1  ;;  %vm728_vm0 = vcmask 457728   ;;  %vm730_vm1 = vcmask 523264  }
  0xb3   : > { %v312_v11 = vsel %vm311_vm3, %v298_v10, 0.0 }
  0xb4   : > { %865 = vmatmul.msk.f32.vlgmr.msra.gmra.mxu0 %vm319_vm2, %v312_v11 }
 0x131   : > { %v340_v13 = vpop.f32.mrf.mxu0 }
 0x132   : > { %v341_v14 = vadd.f32 %v955_v12, %v340_v13 }
 0x134   : > { %v343_v15 = vmax.f32 %v341_v14, 0.0 }
 0x136   : > { %v360_v17 = vperm.slane %v343_v15, 0  ;;  %v353_v19 = vrot.slane %v343_v15, 1  ;;  %v354_v21 = vrot.slane %v343_v15, 2  ;;  %v355_v22 = vrot.slane %v343_v15, 3 }
 0x137   : > { %v356_v25 = vrot.slane %v343_v15, 4  ;;  %v357_v26 = vrot.slane %v343_v15, 5  ;;  %v358_v27 = vrot.slane %v343_v15, 6  ;;  %v359_v28 = vrot.slane %v343_v15, 7 }
 0x138   : > { %v376_v29 = vadd.f32 %v360_v17, %v344_v16  ;;  %v361_v30 = vperm.slane %v353_v19, 0  ;;  %v362_v31 = vperm.slane %v354_v21, 0  ;;  %v363_v32 = vperm.slane %v355_v22, 0 }
 0x139   : > { %v364_v36 = vperm.slane %v356_v25, 0  ;;  %v365_v37 = vperm.slane %v357_v26, 0  ;;  %v366_v38 = vperm.slane %v358_v27, 0  ;;  %v367_v39 = vperm.slane %v359_v28, 0 }
 0x13a   : > { %866 = vmatpush.xpose.msk.msra.mxu1 %vm384_vm4, %v376_v29  ;;  %v377_v40 = vadd.f32 %v361_v30, %v345_v18  ;;  %v378_v41 = vadd.f32 %v362_v31, %v346_v20  ;;  %v379_v42 = vadd.f32 %v363_v32, %v347_v23 }
 0x13b   : > { %v380_v43 = vadd.f32 %v364_v36, %v348_v24  ;;  %v381_v44 = vadd.f32 %v365_v37, %v349_v33  ;;  %v382_v45 = vadd.f32 %v366_v38, %v350_v34  ;;  %v383_v46 = vadd.f32 %v367_v39, %v351_v35 }
 0x13c   : > { %868 = vmatpush.xpose.msk.msra.mxu2 %vm384_vm4, %v377_v40  ;;  %870 = vmatpush.xpose.msk.msra.mxu3 %vm384_vm4, %v378_v41 }
 0x13d   : > { %872 = vmatpush.xpose.msk.msrb.mxu0 %vm384_vm4, %v379_v42  ;;  %867 = vmatmul.msk.f32.vlgmr.msra.gmra.mxu1 %vm384_vm4, %v376_v29 }
 0x13e   : > { %874 = vmatpush.xpose.msk.msrb.mxu1 %vm384_vm4, %v380_v43 }
 0x13f   : > { %869 = vmatmul.msk.f32.vlgmr.msra.gmra.mxu2 %vm384_vm4, %v377_v40  ;;  %871 = vmatmul.msk.f32.vlgmr.msra.gmra.mxu3 %vm384_vm4, %v378_v41 }
 0x140   : > { %876 = vmatpush.xpose.msk.msrb.mxu2 %vm384_vm4, %v381_v44  ;;  %878 = vmatpush.xpose.msk.msrb.mxu3 %vm384_vm4, %v382_v45 }
 0x141   : > { %880 = vmatpush.xpose.msk.msra.mxu0 %vm384_vm4, %v383_v46 }
 0x142   : > { %873 = vmatmul.msk.f32.vlgmr.msrb.gmra.mxu0 %vm384_vm4, %v379_v42 }
 0x145   : > { %875 = vmatmul.msk.f32.vlgmr.msrb.gmra.mxu1 %vm384_vm4, %v380_v43 }
 0x147   : > { %877 = vmatmul.msk.f32.vlgmr.msrb.gmra.mxu2 %vm384_vm4, %v381_v44  ;;  %879 = vmatmul.msk.f32.vlgmr.msrb.gmra.mxu3 %vm384_vm4, %v382_v45 }
 0x14a   : > { %881 = vmatmul.msk.f32.vlgmr.msra.gmra.mxu0 %vm384_vm4, %v383_v46 }
 0x1ba   : > { %v1278_v47 = vpop.f32.mrf.mxu1 }
 0x1bb   : > { %v667_v49 = vrot.slane %v1278_v47, 5  ;;  %v633_v50 = vrot.slane %v1278_v47, 3  ;;  %v599_v51 = vrot.slane %v1278_v47, 1  ;;  %v650_v52 = vrot.slane %v1278_v47, 4 }
 0x1bc   : > { %v616_v53 = vrot.slane %v1278_v47, 2  ;;  %v701_v58 = vrot.slane %v1278_v47, 7  ;;  %v684_v59 = vrot.slane %v1278_v47, 6 }
 0x1bf   : > { %v1280_v48 = vpop.f32.mrf.mxu0 }
 0x1c0   : > { %v672_v56 = vrot.slane %v1280_v48, 2  ;;  %v603_v57 = vrot.slane %v1280_v48, 6  ;;  %v655_v0 = vrot.slane %v1280_v48, 1  ;;  %v620_v3 = vrot.slane %v1280_v48, 7 }
 0x1c1   : > { %v706_v4 = vrot.slane %v1280_v48, 4  ;;  %v689_v9 = vrot.slane %v1280_v48, 3 }
 0x1c2   : > { %v1287_v54 = vpop.f32.mrf.mxu2  ;;  %v1289_v55 = vpop.f32.mrf.mxu3 }
 0x1c3   : > { %v1295_v60 = vpop.f32.mrf.mxu1  ;;  %v668_v61 = vrot.slane %v1287_v54, 4  ;;  %v670_v62 = vrot.slane %v1289_v55, 3  ;;  %v634_v63 = vrot.slane %v1287_v54, 2  ;;  %v636_v1 = vrot.slane %v1289_v55, 1 }
 0x1c4   : > { %v600_v2 = vsel %vm578_vm5, %v1287_v54, %v599_v51  ;;  %v601_v8 = vrot.slane %v1289_v55, 7  ;;  %v674_v11 = vrot.slane %v1295_v60, 1  ;;  %v639_v13 = vrot.slane %v1295_v60, 7 }
 0x1c5   : > { %v669_v6 = vsel %vm578_vm5, %v668_v61, %v667_v49  ;;  %v635_v7 = vsel %vm578_vm5, %v634_v63, %v633_v50  ;;  %v605_v17 = vrot.slane %v1295_v60, 5  ;;  %v651_v21 = vrot.slane %v1287_v54, 3 }
 0x1c6   : > { %v671_v10 = vsel %vm581_vm6, %v670_v62, %v669_v6  ;;  %v637_v12 = vsel %vm581_vm6, %v636_v1, %v635_v7  ;;  %v602_v16 = vsel %vm581_vm6, %v601_v8, %v600_v2  ;;  %v653_v25 = vrot.slane %v1289_v55, 2 }
 0x1c7   : > { %v1306_v5 = vpop.f32.mrf.mxu0  ;;  %v673_v14 = vsel %vm584_vm7, %v672_v56, %v671_v10  ;;  %v638_v15 = vsel %vm584_vm7, %v1280_v48, %v637_v12  ;;  %v604_v20 = vsel %vm584_vm7, %v603_v57, %v602_v16  ;;  %v652_v29 = vsel %vm578_vm5, %v651_v21, %v650_v52 }
 0x1c8   : > { %v679_v18 = vrot.slane %v1306_v5, 6  ;;  %v645_v19 = vrot.slane %v1306_v5, 4  ;;  %v675_v22 = vsel %vm587_vm8, %v674_v11, %v673_v14  ;;  %v640_v23 = vsel %vm587_vm8, %v639_v13, %v638_v15 }
 0x1c9   : > { %v611_v24 = vrot.slane %v1306_v5, 2  ;;  %v606_v28 = vsel %vm587_vm8, %v605_v17, %v604_v20  ;;  %v617_v30 = vrot.slane %v1287_v54, 1  ;;  %v702_v31 = vrot.slane %v1287_v54, 6 }
 0x1ca   : > { %v1329_v26 = vpop.f32.mrf.mxu2  ;;  %v1331_v27 = vpop.f32.mrf.mxu3  ;;  %v654_v38 = vsel %vm581_vm6, %v653_v25, %v652_v29  ;;  %v622_v62 = vrot.slane %v1295_v60, 6  ;;  %v577_v6 = vrot.slane %v1287_v54, 7  ;;  %v662_v7 = vrot.slane %v1306_v5, 5 }
 0x1cb   : > { %v676_v32 = vsel %vm590_vm9, %v1329_v26, %v675_v22  ;;  %v677_v33 = vrot.slane %v1331_v27, 7  ;;  %v641_v34 = vrot.slane %v1329_v26, 6  ;;  %v643_v35 = vrot.slane %v1331_v27, 5 }
 0x1cc   : > { %v607_v36 = vrot.slane %v1329_v26, 4  ;;  %v609_v37 = vrot.slane %v1331_v27, 3  ;;  %v658_v39 = vrot.slane %v1329_v26, 7  ;;  %v656_v42 = vsel %vm584_vm7, %v655_v0, %v654_v38 }
 0x1cd   : > { %v678_v40 = vsel %vm593_vm10, %v677_v33, %v676_v32  ;;  %v642_v41 = vsel %vm590_vm9, %v641_v34, %v640_v23  ;;  %v660_v43 = vrot.slane %v1331_v27, 6  ;;  %v657_v49 = vsel %vm587_vm8, %v1295_v60, %v656_v42 }
 0x1ce   : > { %v680_v44 = vsel %vm596_vm11, %v679_v18, %v678_v40  ;;  %v644_v45 = vsel %vm593_vm10, %v643_v35, %v642_v41  ;;  %v608_v46 = vsel %vm590_vm9, %v607_v36, %v606_v28  ;;  %v659_v52 = vsel %vm590_vm9, %v658_v39, %v657_v49 }
 0x1cf   : > { %681 = vrot.lane.b32.xlu0 %v680_v44, %s1092_s26  ;;  %v646_v50 = vsel %vm596_vm11, %v645_v19, %v644_v45  ;;  %v610_v51 = vsel %vm593_vm10, %v609_v37, %v608_v46  ;;  %v618_v56 = vsel %vm578_vm5, %v617_v30, %v616_v53  ;;  %v624_v63 = vrot.slane %v1329_v26, 5  ;;  %s1030_s26 = sshra.s32 %s748_s23, 4  ;;  %s1031_s26 = int_to_ptr.hbm [resolvable:$true] %s1030_s26 }
 0x1d0   : > { %647 = vrot.lane.b32.xlu2 %v646_v50, %s1093_s14  ;;  %v612_v57 = vsel %vm596_vm11, %v611_v24, %v610_v51  ;;  %v619_v61 = vsel %vm581_vm6, %v1289_v55, %v618_v56  ;;  %v661_v0 = vsel %vm593_vm10, %v660_v43, %v659_v52  ;;  %v626_v2 = vrot.slane %v1331_v27, 4  ;;  %s1032_s14 = scalar_lea.hbm %s1031_s26, 8  ;;  %p1037_p9 = scmp.lt.s32.totalorder %s1031_s26, %s1465_s5 }
 0x1d1   : > { %613 = vrot.lane.b32.xlu1 %v612_v57, %s1094_s11  ;;  %v621_v1 = vsel %vm584_vm7, %v620_v3, %v619_v61  ;;  %v703_v53 = vsel %vm578_vm5, %v702_v31, %v701_v58  ;;  %v704_v10 = vrot.slane %v1289_v55, 5  ;;  %v685_v12 = vrot.slane %v1287_v54, 5  ;;  %p1033_p1 = scmp.ne.s32.totalorder %s1031_s26, %s1032_s14 }
 0x1d2   : > { %v623_v8 = vsel %vm587_vm8, %v622_v62, %v621_v1  ;;  %v687_v3 = vrot.slane %v1289_v55, 4  ;;  %v583_v13 = vrot.slane %v1280_v48, 5  ;;  %v663_v14 = vsel %vm596_vm11, %v662_v7, %v661_v0 }
 0x1d3   : > { %v625_v11 = vsel %vm590_vm9, %v624_v63, %v623_v8  ;;  %v628_v15 = vrot.slane %v1306_v5, 3  ;;  %v705_v16 = vsel %vm581_vm6, %v704_v10, %v703_v53  ;;  %v708_v18 = vrot.slane %v1295_v60, 3  ;;  %p1034_p4 = pnand %p1033_p1, %p1198_p3 }
 0x1d4   : > { %v627_v58 = vsel %vm593_vm10, %v626_v2, %v625_v11  ;;  %v707_v17 = vsel %vm584_vm7, %v706_v4, %v705_v16  ;;  %v710_v54 = vrot.slane %v1329_v26, 2  ;;  %v686_v19 = vsel %vm578_vm5, %v685_v12, %v684_v59 }
 0x1d5   : > { %v688_v20 = vsel %vm581_vm6, %v687_v3, %v686_v19  ;;  %v693_v21 = vrot.slane %v1329_v26, 1  ;;  %v579_v22 = vsel %vm578_vm5, %v577_v6, %v1278_v47  ;;  %v580_v23 = vrot.slane %v1289_v55, 6  ;;  %p1035_p11 = pneg %p1034_p4 }
 0x1d6   : > { %v629_v24 = vsel %vm596_vm11, %v628_v15, %v627_v58  ;;  %v712_v4 = vrot.slane %v1331_v27, 1  ;;  %v690_v25 = vsel %vm584_vm7, %v689_v9, %v688_v20  ;;  %v691_v28 = vrot.slane %v1295_v60, 2 }
 0x1d7   : > { %v709_v59 = vsel %vm587_vm8, %v708_v18, %v707_v17  ;;  %v582_v29 = vsel %vm581_vm6, %v580_v23, %v579_v22  ;;  %v586_v47 = vrot.slane %v1295_v60, 4  ;;  %v592_v55 = vrot.slane %v1331_v27, 2 }
 0x1d8   : > { %664 = vrot.lane.b32.xlu2 %v663_v14, %s1095_s8  ;;  %v711_v30 = vsel %vm590_vm9, %v710_v54, %v709_v59  ;;  %v692_v48 = vsel %vm587_vm8, %v691_v28, %v690_v25  ;;  %v585_v9 = vsel %vm584_vm7, %v583_v13, %v582_v29  ;;  %v589_v31 = vrot.slane %v1329_v26, 3 }
 0x1d9   : > { %630 = vrot.lane.b32.xlu1 %v629_v24, %s1096_s15  ;;  %v694_v32 = vsel %vm590_vm9, %v693_v21, %v692_v48  ;;  %v588_v33 = vsel %vm587_vm8, %v586_v47, %v585_v9  ;;  %v595_v34 = vrot.slane %v1306_v5, 1  ;;  %v713_v35 = vsel %vm593_vm10, %v712_v4, %v711_v30  ;;  %s1036_s15 = scalar_lea.hbm %s1465_s5, 16 }
 0x1da   : > { %v591_v60 = vsel %vm590_vm9, %v589_v31, %v588_v33  ;;  %v695_v37 = vsel %vm593_vm10, %v1331_v27, %v694_v32  ;;  %v696_v26 = vrot.slane %v1306_v5, 7  ;;  %v714_v39 = vsel %vm596_vm11, %v1306_v5, %v713_v35  ;;  %p1038_p2 = scmp.lt.s32.totalorder %s1036_s15, %s1032_s14 }
 0x1db   : > { %v594_v36 = vsel %vm593_vm10, %v592_v55, %v591_v60 }
 0x1dc   : > { %v597_v38 = vsel %vm596_vm11, %v595_v34, %v594_v36  ;;  %v697_v40 = vsel %vm596_vm11, %v696_v26, %v695_v37  ;;  %p1039_p10 = por %p1038_p2, %p1037_p9 }
 0x1de   : > { %p1040_p12 = pnand %p1039_p10, %p1035_p11 }
 0x1e0   : > { %715 = vrot.lane.b32.xlu2 %v714_v39, %s1097_s29 }
 0x1e1   : > { %698 = vrot.lane.b32.xlu1 %v697_v40, %s1098_s9 }
 0x22a   : > { %v648_v41 = vpop.permute.xlu2 %647 }
 0x232   : > { %v665_v43 = vpop.permute.xlu2 %664 }
 0x23a   : > { %v716_v52 = vpop.permute.xlu2 %715 }
 0x241   : > { %v682_v49 = vpop.permute.xlu0 %681 }
 0x243   : > { %v614_v42 = vpop.permute.xlu1 %613 }
 0x244   : > { %v719_v27 = vsel %vm718_vm12, %v597_v38, %v614_v42 }
 0x24b   : > { %v631_v44 = vpop.permute.xlu1 %630 }
 0x24c   : > { %v720_v45 = vsel %vm319_vm2, %v719_v27, %v631_v44 }
 0x24d   : > { %v722_v46 = vsel %vm721_vm13, %v720_v45, %v648_v41 }
 0x24e   : > { %v723_v5 = vsel %vm384_vm4, %v722_v46, %v665_v43 }
 0x24f   : > { %v725_v51 = vsel %vm724_vm14, %v723_v5, %v682_v49 }
 0x253   : > { %v699_v50 = vpop.permute.xlu1 %698 }
 0x254   : > { %v727_v56 = vsel %vm726_vm15, %v725_v51, %v699_v50 }
 0x255   : > { %v729_v57 = vsel %vm728_vm0, %v727_v56, %v716_v52 }
 0x256   : > { %731 = vst.msk [vmem:[%s287_s17] sm:$0xff] %vm730_vm1, %v729_v57 }
 0x257   : > { %1043 = shalt.err (!%p1040_p12)
}
 0x258   : > { %893 = dma.vmem_to_hbm [thread:$0]  (%p1198_p3), %s746_s16, 128, %s748_s23, %s733_s22  }
 0x259 PF: > { %s759_s28 = sand.u32 1, %s1074_s18   ;;  %p1473_p13 = scmp.ge.s32.totalorder %s1086_s21, 2 }
 0x25a   : > { %s760_s27 = scalar_lea.sflag [#allocation4], %s759_s28 }
 0x25b   : > { %p904_p0 = pnand %p1473_p13, %p1164_p6 }
 0x25d   : > { %p905_p5 = pneg %p904_p0 }
 0x25f   : > { %1069 = dma.done.wait (%p905_p5), %s760_s27, 128  }
 0x260   : > { %1071 = vsyncadd (%p905_p5), %s760_s27, 4294967168  ;;  %p19_p7 = scmp.ge.s32.totalorder %s1182_s7, 4   ;;  %s1474_s18 = smov %s1078_s19 }
 0x261   : > { %s1475_s19 = smov %s1082_s20  ;;  %s1476_s20 = smov %s1194_s12 }
 0x262   : > { %s1477_s21 = smov %s1182_s7  ;;  %21 = sbr.rel (!%p19_p7) target bundleno = 6 (0x6), region = 95 }
 0x267   :  { %766 = vsyncpa [#allocation3], 1 }
 0x268   :  { %768 = vsyncpa [#allocation3 + $0x1], 1 }
 0x269   :  { %769 = vsyncpa [#allocation6], 1 }
 0x26a   :  { %770 = vsyncpa [#allocation4], 1 }
 0x26b   :  { %772 = vsyncpa [#allocation4 + $0x1], 1 }

</bundles_post_ra>
